<compile_context>
chip_gen: v6e
topology: v6e:2x2x1
jax: 0.10.0
libtpu: 0.0.40
codegen_flags: <defaults>
</compile_context>

<pallas_src>
import jax
import jax.numpy as jnp
from jax.experimental import pallas as pl
from jax.experimental.pallas import tpu as pltpu


# ---------------------------------------------------------------------------
# Fused kernel: accumulate pooled @ w_patch over the contraction axis, then
# epilogue: + b_patch -> @ w_cls^T -> + b_cls -> lane-dense store.
#   pooled:(TB,TK) bf16   w_patch:(TK,W) bf16   b_patch:(1,W) f32
#   w_cls_t:(W,Npad) bf16 b_cls:(1,Npad) f32    -> logits:(TB,Npad) f32
# ---------------------------------------------------------------------------
def _fused_kernel(pooled_ref, w_patch_ref, b_patch_ref, w_cls_ref, b_cls_ref,
                  logit_ref, acc_ref):
    k = pl.program_id(1)

    @pl.when(k == 0)
    def _():
        acc_ref[...] = jnp.zeros_like(acc_ref)

    # (TB, TK) @ (TK, W) on the MXU, f32 accumulation in the VMEM scratch.
    acc_ref[...] += jnp.dot(pooled_ref[...], w_patch_ref[...],
                            preferred_element_type=jnp.float32)

    @pl.when(k == pl.num_programs(1) - 1)
    def _():
        # Patch-embed bias added once on the pooled (TB, W) embed (f32 VPU).
        # nn.Dropout in eval mode is the identity.
        # TODO(synk): training-mode dropout (pltpu.prng_* masking) not implemented.
        embed = acc_ref[...] + b_patch_ref[...]                      # (TB, W) f32
        logits = jnp.dot(embed.astype(w_cls_ref.dtype), w_cls_ref[...],
                         preferred_element_type=jnp.float32)         # (TB, Npad)
        logit_ref[...] = (logits + b_cls_ref[...]).astype(logit_ref.dtype)


# ---------------------------------------------------------------------------
# Tile / VMEM budgeting
# ---------------------------------------------------------------------------
def _pick_tile(dim, preferred):
    """Largest preferred tile that divides `dim`; else the full dim."""
    for t in preferred:
        if t <= dim and dim % t == 0:
            return t
    return dim


def _vmem_budget():
    """(tile budget, vmem_limit_bytes) derived from this chip's VMEM capacity.

    v5e/v6e: 128 MiB -> large tiles toward the HBM roofline plateau.
    v7x: 64 MiB per TC -> ~45 MiB tile budget.  Fallback assumes the smallest."""
    try:
        cap = int(pltpu.get_tpu_info().vmem_capacity_bytes)
    except Exception:
        cap = 64 << 20
    return int(cap * 0.70), int(cap * 0.85)


def _choose_tiles(B, D, W, Npad, in_itemsize, budget_bytes):
    """Tile the batch (TB) and contraction (TK) axes under a full-buffer budget."""

    def footprint(tb, tk):
        pooled = 2 * tb * tk * in_itemsize              # double-buffered input tile
        w_patch = 2 * tk * W * in_itemsize              # double-buffered (moves with k)
        consts = W * 4 + W * Npad * in_itemsize + Npad * 4   # single-buffered constants
        out = 2 * tb * Npad * 4                         # double-buffered output tile
        acc = tb * W * 4                                # f32 accumulator scratch
        return pooled + w_patch + consts + out + acc

    TB = _pick_tile(B, (512, 256, 128, 64, 32, 16, 8))
    TK = _pick_tile(D, (2048, 1024, 512, 256, 128))

    # Keep >= 2 programs on the "parallel" batch axis when B allows, so both
    # v7x TensorCores get work instead of one idling.
    if B >= 16 and TB == B and (B // 2) % 8 == 0:
        TB = B // 2

    # Shrink the contraction tile first (keeps the MXU-filling TB large),
    # then the batch tile; stop at (8, 128) alignment floors.
    while footprint(TB, TK) > budget_bytes:
        if TK > 128 and TK % 2 == 0 and (TK // 2) % 128 == 0:
            TK //= 2
        elif TB > 8 and TB % 2 == 0 and (TB // 2) % 8 == 0:
            TB //= 2
        else:
            break
    return TB, TK


# ---------------------------------------------------------------------------
# Wrapper
# ---------------------------------------------------------------------------
def pool_image(image, patch):
    """NCHW image -> (B, D) token-mean-pooled patch features, D = C*patch*patch.

    Equivalent to mean over the token axis of patchify(image) but never
    materializes the transposed (B, P, D) tensor in HBM (~P x fewer kernel
    DMA bytes)."""
    B, C, H, W = image.shape
    gh, gw = H // patch, W // patch
    x = image.reshape(B, C, gh, patch, gw, patch)
    pooled = jnp.mean(x, axis=(2, 4))                   # (B, C, patch, patch)
    return pooled.reshape(B, C * patch * patch)


def _run_fused(pooled, w_patch, b_patch, w_cls_t, b_cls, TB, TK, vmem_limit,
               single_buffer_consts):
    B, D = pooled.shape
    W = w_patch.shape[1]
    Npad = w_cls_t.shape[1]
    grid = (B // TB, D // TK)

    if single_buffer_consts:
        # Constant-window operands: index_map never moves -> one buffer suffices.
        const_kw = dict(pipeline_mode=pl.Buffered(buffer_count=1))
    else:
        const_kw = {}

    return pl.pallas_call(
        _fused_kernel,
        out_shape=jax.ShapeDtypeStruct((B, Npad), jnp.float32),
        grid_spec=pltpu.PrefetchScalarGridSpec(
            num_scalar_prefetch=0,
            grid=grid,
            in_specs=[
                pl.BlockSpec((TB, TK), lambda i, k: (i, k)),            # pooled
                pl.BlockSpec((TK, W), lambda i, k: (k, 0)),             # w_patch
                pl.BlockSpec((1, W), lambda i, k: (0, 0), **const_kw),  # b_patch
                pl.BlockSpec((W, Npad), lambda i, k: (0, 0), **const_kw),  # w_cls^T
                pl.BlockSpec((1, Npad), lambda i, k: (0, 0), **const_kw),  # b_cls
            ],
            out_specs=pl.BlockSpec((TB, Npad), lambda i, k: (i, 0)),
            scratch_shapes=[pltpu.VMEM((TB, W), jnp.float32)],          # embed acc
        ),
        compiler_params=pltpu.CompilerParams(
            dimension_semantics=("parallel", "arbitrary"),
            vmem_limit_bytes=vmem_limit,
        ),
    )(pooled, w_patch, b_patch, w_cls_t, b_cls)


def video_classifier_forward(image, params, patch, return_padded=False):
    compute_dtype = params["w_patch_c"].dtype
    pooled = pool_image(image, patch).astype(compute_dtype)     # (B, D) bf16
    B, D = pooled.shape
    W = params["w_patch_c"].shape[1]
    Npad = params["w_cls_t_pad"].shape[1]

    budget, vmem_limit = _vmem_budget()
    TB, TK = _choose_tiles(B, D, W, Npad, jnp.dtype(compute_dtype).itemsize, budget)

    args = (pooled, params["w_patch_c"], params["b_patch"],
            params["w_cls_t_pad"], params["b_cls_pad"])
    try:
        logits_pad = _run_fused(*args, TB, TK, vmem_limit, True)
    except Exception:
        # Fallback for JAX versions without pipeline_mode=pl.Buffered support
        # on TPU pallas_call (costs one extra buffer per constant operand).
        logits_pad = _run_fused(*args, TB, TK, vmem_limit, False)

    if return_padded or params["num_classes"] == Npad:
        return logits_pad           # consumers can take lane-padded logits for free
    return logits_pad[:, :params["num_classes"]]


def init_params(key, in_chans, patch, width, num_classes,
                compute_dtype=jnp.bfloat16):
    patch_dim = in_chans * patch * patch
    k1, k2 = jax.random.split(key)
    # visual stub params (deterministic synthetic init)
    w_patch = jax.random.normal(k1, (patch_dim, width), jnp.float32) * 0.02
    b_patch = jnp.zeros((1, width), jnp.float32)
    # fc_cls init per the module: weight ~ N(0, 0.01), bias = 0 (PyTorch (N, W) layout)
    w_cls = jax.random.normal(k2, (num_classes, width), jnp.float32) * 0.01
    b_cls = jnp.zeros((num_classes,), jnp.float32)
    # One-time head prep (outside the per-call path): pre-transpose to (W, N),
    # lane-pad N to a multiple of 128, cast matmul operands to bf16.
    n_pad = ((num_classes + 127) // 128) * 128
    w_cls_t_pad = jnp.zeros((width, n_pad), compute_dtype).at[:, :num_classes].set(
        w_cls.T.astype(compute_dtype))
    b_cls_pad = jnp.zeros((1, n_pad), jnp.float32).at[:, :num_classes].set(b_cls)
    return {
        "w_patch": w_patch, "b_patch": b_patch,        # f32 originals (reference)
        "w_cls": w_cls, "b_cls": b_cls,
        "w_patch_c": w_patch.astype(compute_dtype),    # kernel operands
        "w_cls_t_pad": w_cls_t_pad, "b_cls_pad": b_cls_pad,
        "num_classes": num_classes,
    }


# ---------------------------------------------------------------------------
# Self-test
# ---------------------------------------------------------------------------
def _patchify_ref(image, patch):
    B, C, H, W = image.shape
    gh, gw = H // patch, W // patch
    x = image.reshape(B, C, gh, patch, gw, patch)
    x = jnp.transpose(x, (0, 2, 4, 1, 3, 5))
    return x.reshape(B, gh * gw, C * patch * patch)


if __name__ == "__main__":
    B, C, H, W_img = 2, 4, 16, 16
    patch = 8          # -> P = 4 patches, D = C*patch*patch = 256
    width = 32
    num_classes = 10

    key = jax.random.PRNGKey(0)
    k_img, k_par = jax.random.split(key)
    image = jax.random.normal(k_img, (B, C, H, W_img), jnp.float32)
    params = init_params(k_par, C, patch, width, num_classes)

    logits = video_classifier_forward(image, params, patch)
    logits = jax.block_until_ready(logits)
    assert logits.shape == (B, num_classes)

    # Reference 1: original module op order, full f32 (project -> +bias -> mean
    # over patch tokens -> fc_cls).  Algebraically equal to the kernel's order.
    patches = _patchify_ref(image, patch)
    embed_f32 = jnp.mean(patches @ params["w_patch"] + params["b_patch"], axis=1)
    ref_f32 = embed_f32 @ params["w_cls"].T + params["b_cls"]

    # Reference 2: dtype-mirrored (same bf16 operands / f32 accumulation as the kernel).
    pooled_m = jnp.mean(patches, axis=1).astype(params["w_patch_c"].dtype)
    embed_m = jnp.dot(pooled_m, params["w_patch_c"],
                      preferred_element_type=jnp.float32) + params["b_patch"]
    ref_mirror = (jnp.dot(embed_m.astype(params["w_cls_t_pad"].dtype),
                          params["w_cls_t_pad"], preferred_element_type=jnp.float32)
                  + params["b_cls_pad"])[:, :num_classes]

    assert jnp.allclose(logits, ref_mirror, atol=1e-3, rtol=1e-2), \
        float(jnp.max(jnp.abs(logits - ref_mirror)))
    assert jnp.allclose(logits, ref_f32, atol=5e-3, rtol=5e-2), \
        float(jnp.max(jnp.abs(logits - ref_f32)))

    print("KERNEL_OK")
</pallas_src>

<mosaic_0001>
module attributes {stable_mosaic.version = 11 : i64} {
  func.func @_fused_kernel(%arg0: i32, %arg1: i32, %arg2: memref<2x256xbf16, #tpu.memory_space<vmem>>, %arg3: memref<256x32xbf16, #tpu.memory_space<vmem>>, %arg4: memref<1x32xf32, #tpu.memory_space<vmem>>, %arg5: memref<32x128xbf16, #tpu.memory_space<vmem>>, %arg6: memref<1x128xf32, #tpu.memory_space<vmem>>, %arg7: memref<2x128xf32, #tpu.memory_space<vmem>>, %arg8: memref<2x32xf32, #tpu.memory_space<vmem>>) attributes {dimension_semantics = [#tpu.dimension_semantics<parallel>, #tpu.dimension_semantics<arbitrary>], iteration_bounds = array<i64: 1, 1>, scalar_prefetch = 0 : i64, scratch_operands = 1 : i64, tpu.core_type = #tpu.core_type<tc>, window_params = [{transform_indices = @transform_0, window_bounds = array<i64: 2, 256>}, {transform_indices = @transform_1, window_bounds = array<i64: 256, 32>}, {pipeline_mode = #tpu.pipeline_mode<synchronous>, transform_indices = @transform_2, window_bounds = array<i64: 1, 32>}, {pipeline_mode = #tpu.pipeline_mode<synchronous>, transform_indices = @transform_3, window_bounds = array<i64: 32, 128>}, {pipeline_mode = #tpu.pipeline_mode<synchronous>, transform_indices = @transform_4, window_bounds = array<i64: 1, 128>}, {transform_indices = @transform_5, window_bounds = array<i64: 2, 128>}]} {
    %c0_i32 = arith.constant 0 : i32
    %0 = arith.cmpi eq, %arg1, %c0_i32 : i32
    %1 = arith.extui %0 : i1 to i32
    %c0_i32_0 = arith.constant 0 : i32
    %2 = arith.cmpi ne, %1, %c0_i32_0 : i32
    scf.if %2 {
      %cst_10 = arith.constant 0.000000e+00 : f32
      %12 = vector.broadcast %cst_10 : f32 to vector<2x32xf32>
      %c0_11 = arith.constant 0 : index
      %c0_12 = arith.constant 0 : index
      %13 = vector.load %arg8[%c0_11, %c0_12] : memref<2x32xf32, #tpu.memory_space<vmem>>, vector<2x32xf32>
      tpu.vector_store %arg8[%c0_11, %c0_12], %12 {strides = array<i32>} : memref<2x32xf32, #tpu.memory_space<vmem>>, vector<2x32xf32>,
    } else {
    }
    %c0 = arith.constant 0 : index
    %c0_1 = arith.constant 0 : index
    %3 = vector.load %arg8[%c0, %c0_1] : memref<2x32xf32, #tpu.memory_space<vmem>>, vector<2x32xf32>
    %c0_2 = arith.constant 0 : index
    %c0_3 = arith.constant 0 : index
    %4 = vector.load %arg2[%c0_2, %c0_3] : memref<2x256xbf16, #tpu.memory_space<vmem>>, vector<2x256xbf16>
    %c0_4 = arith.constant 0 : index
    %c0_5 = arith.constant 0 : index
    %5 = vector.load %arg3[%c0_4, %c0_5] : memref<256x32xbf16, #tpu.memory_space<vmem>>, vector<256x32xbf16>
    %cst = arith.constant dense<0.000000e+00> : vector<2x32xf32>
    %6 = tpu.matmul %4, %5, %cst {dimension_numbers = #tpu.dot_dimension_numbers<[1], [0], [0], [1], [0, 0, 1, 1], [], []>} : vector<2x256xbf16>, vector<256x32xbf16>, vector<2x32xf32> -> vector<2x32xf32>
    %7 = arith.addf %3, %6 : vector<2x32xf32>
    %c0_6 = arith.constant 0 : index
    %c0_7 = arith.constant 0 : index
    %8 = vector.load %arg8[%c0_6, %c0_7] : memref<2x32xf32, #tpu.memory_space<vmem>>, vector<2x32xf32>
    tpu.vector_store %arg8[%c0_6, %c0_7], %7 {strides = array<i32>} : memref<2x32xf32, #tpu.memory_space<vmem>>, vector<2x32xf32>,
    %c0_i32_8 = arith.constant 0 : i32
    %9 = arith.cmpi eq, %arg1, %c0_i32_8 : i32
    %10 = arith.extui %9 : i1 to i32
    %c0_i32_9 = arith.constant 0 : i32
    %11 = arith.cmpi ne, %10, %c0_i32_9 : i32
    scf.if %11 {
      %c0_10 = arith.constant 0 : index
      %c0_11 = arith.constant 0 : index
      %12 = vector.load %arg8[%c0_10, %c0_11] : memref<2x32xf32, #tpu.memory_space<vmem>>, vector<2x32xf32>
      %c0_12 = arith.constant 0 : index
      %c0_13 = arith.constant 0 : index
      %13 = vector.load %arg4[%c0_12, %c0_13] : memref<1x32xf32, #tpu.memory_space<vmem>>, vector<1x32xf32>
      %14 = vector.broadcast %13 : vector<1x32xf32> to vector<2x32xf32>
      %15 = arith.addf %12, %14 : vector<2x32xf32>
      %16 = arith.truncf %15 : vector<2x32xf32> to vector<2x32xbf16>
      %c0_14 = arith.constant 0 : index
      %c0_15 = arith.constant 0 : index
      %17 = vector.load %arg5[%c0_14, %c0_15] : memref<32x128xbf16, #tpu.memory_space<vmem>>, vector<32x128xbf16>
      %cst_16 = arith.constant dense<0.000000e+00> : vector<2x128xf32>
      %18 = tpu.matmul %16, %17, %cst_16 {dimension_numbers = #tpu.dot_dimension_numbers<[1], [0], [0], [1], [0, 0, 1, 1], [], []>} : vector<2x32xbf16>, vector<32x128xbf16>, vector<2x128xf32> -> vector<2x128xf32>
      %c0_17 = arith.constant 0 : index
      %c0_18 = arith.constant 0 : index
      %19 = vector.load %arg6[%c0_17, %c0_18] : memref<1x128xf32, #tpu.memory_space<vmem>>, vector<1x128xf32>
      %20 = vector.broadcast %19 : vector<1x128xf32> to vector<2x128xf32>
      %21 = arith.addf %18, %20 : vector<2x128xf32>
      %c0_19 = arith.constant 0 : index
      %c0_20 = arith.constant 0 : index
      %22 = vector.load %arg7[%c0_19, %c0_20] : memref<2x128xf32, #tpu.memory_space<vmem>>, vector<2x128xf32>
      tpu.vector_store %arg7[%c0_19, %c0_20], %21 {strides = array<i32>} : memref<2x128xf32, #tpu.memory_space<vmem>>, vector<2x128xf32>,
    } else {
    }
    return
  }
  func.func @transform_0(%arg0: i32, %arg1: i32) -> (i32, i32) {
    %c0_i32 = arith.constant 0 : i32
    return %arg0, %arg1 : i32, i32
  }
  func.func @transform_1(%arg0: i32, %arg1: i32) -> (i32, i32) {
    %c0_i32 = arith.constant 0 : i32
    %c0_i32_0 = arith.constant 0 : i32
    return %arg1, %c0_i32 : i32, i32
  }
  func.func @transform_2(%arg0: i32, %arg1: i32) -> (i32, i32) {
    %c0_i32 = arith.constant 0 : i32
    %c0_i32_0 = arith.constant 0 : i32
    %c0_i32_1 = arith.constant 0 : i32
    return %c0_i32, %c0_i32_0 : i32, i32
  }
  func.func @transform_3(%arg0: i32, %arg1: i32) -> (i32, i32) {
    %c0_i32 = arith.constant 0 : i32
    %c0_i32_0 = arith.constant 0 : i32
    %c0_i32_1 = arith.constant 0 : i32
    return %c0_i32, %c0_i32_0 : i32, i32
  }
  func.func @transform_4(%arg0: i32, %arg1: i32) -> (i32, i32) {
    %c0_i32 = arith.constant 0 : i32
    %c0_i32_0 = arith.constant 0 : i32
    %c0_i32_1 = arith.constant 0 : i32
    return %c0_i32, %c0_i32_0 : i32, i32
  }
  func.func @transform_5(%arg0: i32, %arg1: i32) -> (i32, i32) {
    %c0_i32 = arith.constant 0 : i32
    %c0_i32_0 = arith.constant 0 : i32
    return %arg0, %c0_i32 : i32, i32
  }
}

module attributes {stable_mosaic.version = 11 : i64} {
  func.func @_fused_kernel(%arg0: i32, %arg1: i32, %arg2: memref<2x256xbf16, #tpu.memory_space<vmem>>, %arg3: memref<256x32xbf16, #tpu.memory_space<vmem>>, %arg4: memref<1x32xf32, #tpu.memory_space<vmem>>, %arg5: memref<32x128xbf16, #tpu.memory_space<vmem>>, %arg6: memref<1x128xf32, #tpu.memory_space<vmem>>, %arg7: memref<2x128xf32, #tpu.memory_space<vmem>>, %arg8: memref<2x32xf32, #tpu.memory_space<vmem>>) attributes {dimension_semantics = [#tpu.dimension_semantics<parallel>, #tpu.dimension_semantics<arbitrary>], iteration_bounds = array<i64: 1, 1>, scalar_prefetch = 0 : i64, scratch_operands = 1 : i64, tpu.core_type = #tpu.core_type<tc>, window_params = [{transform_indices = @transform_0, window_bounds = array<i64: 2, 256>}, {transform_indices = @transform_1, window_bounds = array<i64: 256, 32>}, {pipeline_mode = #tpu.pipeline_mode<synchronous>, transform_indices = @transform_2, window_bounds = array<i64: 1, 32>}, {pipeline_mode = #tpu.pipeline_mode<synchronous>, transform_indices = @transform_3, window_bounds = array<i64: 32, 128>}, {pipeline_mode = #tpu.pipeline_mode<synchronous>, transform_indices = @transform_4, window_bounds = array<i64: 1, 128>}, {transform_indices = @transform_5, window_bounds = array<i64: 2, 128>}]} {
    %c0_i32 = arith.constant 0 : i32
    %0 = arith.cmpi eq, %arg1, %c0_i32 : i32
    %1 = arith.extui %0 : i1 to i32
    %c0_i32_0 = arith.constant 0 : i32
    %2 = arith.cmpi ne, %1, %c0_i32_0 : i32
    scf.if %2 {
      %cst_10 = arith.constant 0.000000e+00 : f32
      %12 = vector.broadcast %cst_10 : f32 to vector<2x32xf32>
      %c0_11 = arith.constant 0 : index
      %c0_12 = arith.constant 0 : index
      %13 = vector.load %arg8[%c0_11, %c0_12] : memref<2x32xf32, #tpu.memory_space<vmem>>, vector<2x32xf32>
      tpu.vector_store %arg8[%c0_11, %c0_12], %12 {strides = array<i32>} : memref<2x32xf32, #tpu.memory_space<vmem>>, vector<2x32xf32>,
    } else {
    }
    %c0 = arith.constant 0 : index
    %c0_1 = arith.constant 0 : index
    %3 = vector.load %arg8[%c0, %c0_1] : memref<2x32xf32, #tpu.memory_space<vmem>>, vector<2x32xf32>
    %c0_2 = arith.constant 0 : index
    %c0_3 = arith.constant 0 : index
    %4 = vector.load %arg2[%c0_2, %c0_3] : memref<2x256xbf16, #tpu.memory_space<vmem>>, vector<2x256xbf16>
    %c0_4 = arith.constant 0 : index
    %c0_5 = arith.constant 0 : index
    %5 = vector.load %arg3[%c0_4, %c0_5] : memref<256x32xbf16, #tpu.memory_space<vmem>>, vector<256x32xbf16>
    %cst = arith.constant dense<0.000000e+00> : vector<2x32xf32>
    %6 = tpu.matmul %4, %5, %cst {dimension_numbers = #tpu.dot_dimension_numbers<[1], [0], [0], [1], [0, 0, 1, 1], [], []>} : vector<2x256xbf16>, vector<256x32xbf16>, vector<2x32xf32> -> vector<2x32xf32>
    %7 = arith.addf %3, %6 : vector<2x32xf32>
    %c0_6 = arith.constant 0 : index
    %c0_7 = arith.constant 0 : index
    %8 = vector.load %arg8[%c0_6, %c0_7] : memref<2x32xf32, #tpu.memory_space<vmem>>, vector<2x32xf32>
    tpu.vector_store %arg8[%c0_6, %c0_7], %7 {strides = array<i32>} : memref<2x32xf32, #tpu.memory_space<vmem>>, vector<2x32xf32>,
    %c0_i32_8 = arith.constant 0 : i32
    %9 = arith.cmpi eq, %arg1, %c0_i32_8 : i32
    %10 = arith.extui %9 : i1 to i32
    %c0_i32_9 = arith.constant 0 : i32
    %11 = arith.cmpi ne, %10, %c0_i32_9 : i32
    scf.if %11 {
      %c0_10 = arith.constant 0 : index
      %c0_11 = arith.constant 0 : index
      %12 = vector.load %arg8[%c0_10, %c0_11] : memref<2x32xf32, #tpu.memory_space<vmem>>, vector<2x32xf32>
      %c0_12 = arith.constant 0 : index
      %c0_13 = arith.constant 0 : index
      %13 = vector.load %arg4[%c0_12, %c0_13] : memref<1x32xf32, #tpu.memory_space<vmem>>, vector<1x32xf32>
      %14 = vector.broadcast %13 : vector<1x32xf32> to vector<2x32xf32>
      %15 = arith.addf %12, %14 : vector<2x32xf32>
      %16 = arith.truncf %15 : vector<2x32xf32> to vector<2x32xbf16>
      %c0_14 = arith.constant 0 : index
      %c0_15 = arith.constant 0 : index
      %17 = vector.load %arg5[%c0_14, %c0_15] : memref<32x128xbf16, #tpu.memory_space<vmem>>, vector<32x128xbf16>
      %cst_16 = arith.constant dense<0.000000e+00> : vector<2x128xf32>
      %18 = tpu.matmul %16, %17, %cst_16 {dimension_numbers = #tpu.dot_dimension_numbers<[1], [0], [0], [1], [0, 0, 1, 1], [], []>} : vector<2x32xbf16>, vector<32x128xbf16>, vector<2x128xf32> -> vector<2x128xf32>
      %c0_17 = arith.constant 0 : index
      %c0_18 = arith.constant 0 : index
      %19 = vector.load %arg6[%c0_17, %c0_18] : memref<1x128xf32, #tpu.memory_space<vmem>>, vector<1x128xf32>
      %20 = vector.broadcast %19 : vector<1x128xf32> to vector<2x128xf32>
      %21 = arith.addf %18, %20 : vector<2x128xf32>
      %c0_19 = arith.constant 0 : index
      %c0_20 = arith.constant 0 : index
      %22 = vector.load %arg7[%c0_19, %c0_20] : memref<2x128xf32, #tpu.memory_space<vmem>>, vector<2x128xf32>
      tpu.vector_store %arg7[%c0_19, %c0_20], %21 {strides = array<i32>} : memref<2x128xf32, #tpu.memory_space<vmem>>, vector<2x128xf32>,
    } else {
    }
    return
  }
  func.func @transform_0(%arg0: i32, %arg1: i32) -> (i32, i32) {
    %c0_i32 = arith.constant 0 : i32
    return %arg0, %arg1 : i32, i32
  }
  func.func @transform_1(%arg0: i32, %arg1: i32) -> (i32, i32) {
    %c0_i32 = arith.constant 0 : i32
    %c0_i32_0 = arith.constant 0 : i32
    return %arg1, %c0_i32 : i32, i32
  }
  func.func @transform_2(%arg0: i32, %arg1: i32) -> (i32, i32) {
    %c0_i32 = arith.constant 0 : i32
    %c0_i32_0 = arith.constant 0 : i32
    %c0_i32_1 = arith.constant 0 : i32
    return %c0_i32, %c0_i32_0 : i32, i32
  }
  func.func @transform_3(%arg0: i32, %arg1: i32) -> (i32, i32) {
    %c0_i32 = arith.constant 0 : i32
    %c0_i32_0 = arith.constant 0 : i32
    %c0_i32_1 = arith.constant 0 : i32
    return %c0_i32, %c0_i32_0 : i32, i32
  }
  func.func @transform_4(%arg0: i32, %arg1: i32) -> (i32, i32) {
    %c0_i32 = arith.constant 0 : i32
    %c0_i32_0 = arith.constant 0 : i32
    %c0_i32_1 = arith.constant 0 : i32
    return %c0_i32, %c0_i32_0 : i32, i32
  }
  func.func @transform_5(%arg0: i32, %arg1: i32) -> (i32, i32) {
    %c0_i32 = arith.constant 0 : i32
    %c0_i32_0 = arith.constant 0 : i32
    return %arg0, %c0_i32 : i32, i32
  }
}

</mosaic_0001>

<bundles_post_ra>
// kernel: tpu_custom_call.1
= control target key start
LH: loop header
LB: loop body
LE: loop exit
PB: predicated region body
PF: predicated region fallthrough
CT: control target
= control target key end

     0   :  { %v74_v8 = vlaneseq  ;;  %v420_v14 = vmov 1966171168   ;;  %s522_s0 = inlined_call_operand.vmem [shape: bf16[2,256], index: 0, kind: input, shape index: {}]   ;;  %s523_s1 = inlined_call_operand.vmem [shape: bf16[256,32], index: 1, kind: input, shape index: {}]   ;;  %s524_s2 = inlined_call_operand.vmem [shape: f32[1,32], index: 2, kind: input, shape index: {}]   ;;  %s525_s3 = inlined_call_operand.vmem [shape: bf16[32,128], index: 3, kind: input, shape index: {}]   ;;  %s526_s4 = inlined_call_operand.vmem [shape: f32[1,128], index: 4, kind: input, shape index: {}]   ;;  %s527_s5 = inlined_call_operand.hbm [shape: f32[2,128], index: 5, kind: output, shape index: {}]  }
   0x1   :  { %v380_v0 = vld [vmem:[%s523_s1 + $0x78] sm:$0xff]   ;;  %v382_v2 = vld [vmem:[%s523_s1 + $0x70] sm:$0xff]   ;;  %v384_v4 = vld [vmem:[%s523_s1 + $0x68] sm:$0xff]   ;;  %v72_v15 = vunpack.c.l.s4 %v420_v14 }
   0x2   :  { %v381_v1 = vld [vmem:[%s523_s1 + $0x38] sm:$0xff]   ;;  %343 = vmatprep.subr.bf16.mxu0 %v380_v0  ;;  %v383_v3 = vld [vmem:[%s523_s1 + $0x30] sm:$0xff]   ;;  %v385_v5 = vld [vmem:[%s523_s1 + $0x28] sm:$0xff]   ;;  %v75_v12 = vshrl.u32 %v74_v8, 7 }
   0x3   :  { %344 = vmatpush3.bf16.msra.mxu0 %v381_v1  ;;  %v386_v6 = vld [vmem:[%s523_s1 + $0x60] sm:$0xff]   ;;  %v388_v9 = vld [vmem:[%s523_s1 + $0x58] sm:$0xff]   ;;  %v390_v11 = vld [vmem:[%s523_s1 + $0x50] sm:$0xff]  }
   0x4   :  { %345 = vmatprep.subr.bf16.mxu0 %v382_v2  ;;  %v387_v7 = vld [vmem:[%s523_s1 + $0x20] sm:$0xff]   ;;  %v389_v10 = vld [vmem:[%s523_s1 + $0x18] sm:$0xff]  }
   0x5   :  { %v321_v13 = vld.sshfl [vmem:[%s522_s0] sm:$0x11 pattern:$0x75316420] }
   0x7   :  { %346 = vmatpush3.bf16.msra.mxu0 %v383_v3 }
   0x8   :  { %347 = vmatprep.subr.bf16.mxu0 %v384_v4 }
   0xb   :  { %348 = vmatpush3.bf16.msra.mxu0 %v385_v5 }
   0xc   :  { %349 = vmatprep.subr.bf16.mxu0 %v386_v6 }
   0xf   :  { %350 = vmatpush3.bf16.msra.mxu0 %v387_v7 }
  0x10   :  { %351 = vmatprep.subr.bf16.mxu0 %v388_v9 }
  0x11   :  { %10 = vsyncpa [#allocation4], 0  ;;  %v391_v16 = vld [vmem:[%s523_s1 + $0x10] sm:$0xff]   ;;  %v70_v17 = vcombine.high %v321_v13, %v321_v13  ;;  %v73_v18 = vunpack.c.0.s8 %v72_v15  ;;  %v392_v19 = vld [vmem:[%s523_s1 + $0x48] sm:$0xff]   ;;  %vm26_vm0 = vcmask 254976   ;;  %v421_v26 = vmov 0.0  }
  0x12   :  { %v393_v21 = vld [vmem:[%s523_s1 + $0x8] sm:$0xff]   ;;  %v394_v23 = vld [vmem:[%s523_s1 + $0x40] sm:$0xff]   ;;  %27 = vst.msk [vmem:[#allocation2] sm:$0x3] %vm26_vm0, %v421_v26  ;;  %368 = vmatprep.subr.bf16.mxu1 %v421_v26  ;;  %vm422_vm1 = vmmov 0   ;;  %vm262_vm2 = vcmask 261120  }
  0x13   :  { %352 = vmatpush3.bf16.msra.mxu0 %v389_v10  ;;  %v76_v20 = vsub.s32 %v73_v18, %v75_v12  ;;  %v395_v24 = vld [vmem:[%s523_s1] sm:$0xff]   ;;  %v396_v27 = vld [vmem:[%s525_s3 + $0x8] sm:$0xff]   ;;  %372 = vmatprep.mubr.msk.bf16.mxu1 %vm422_vm1, %v421_v26  ;;  %s423_s7 = smov [#allocation3]  }
  0x14   :  { %353 = vmatprep.subr.bf16.mxu0 %v390_v11  ;;  %369 = vmatpush3.bf16.msra.mxu1 %v396_v27  ;;  %v397_v28 = vld [vmem:[%s525_s3] sm:$0xff]   ;;  %s313_s8 = sshll.u32 %s423_s7, 4  ;;  %s314_s8 = int_to_ptr.vmem [resolvable:$true] %s313_s8 }
  0x15   :  { %v84_v22 = vrot.slane %v70_v17, %v76_v20  ;;  %v77_v25 = vrot.slane %v321_v13, %v76_v20  ;;  %370 = vmatprep.subr.bf16.mxu1 %v421_v26  ;;  %v338_v36 = vld [vmem:[%s524_s2] ss:$0 sm:$0xff]  ;;  %s398_s9 = scalar_lea.vmem %s314_s8, 32  ;;  %p403_p1 = scmp.lt.s32.totalorder %s314_s8, %s314_s8 }
  0x16   :  { %v339_v40 = vld [vmem:[%s526_s4] ss:$0 sm:$0xff]  ;;  %p399_p0 = scmp.ne.s32.totalorder %s314_s8, %s398_s9  ;;  %p404_p2 = scmp.lt.s32.totalorder %s398_s9, %s398_s9 }
  0x17   :  { %354 = vmatpush3.bf16.msra.mxu0 %v391_v16  ;;  %215 = vmatprep.mubr.bf16.mxu0 %v84_v22 }
  0x18   :  { %355 = vmatprep.subr.bf16.mxu0 %v392_v19  ;;  %371 = vmatpush3.bf16.msra.mxu1 %v397_v28  ;;  %p405_p3 = por %p404_p2, %p403_p1 }
  0x19   :  { %v28_v30 = vld [vmem:[#allocation2] sm:$0x3] }
  0x1a   :  { %p406_p4 = pnand %p405_p3, %p399_p0 }
  0x1b   :  { %356 = vmatpush3.bf16.msra.mxu0 %v393_v21 }
  0x1c   :  { %357 = vmatprep.subr.bf16.mxu0 %v394_v23 }
  0x1f   :  { %358 = vmatpush3.bf16.msra.mxu0 %v395_v24 }
  0x22   :  { %216 = vmatmul.mubr.bf16.vlgmr.msra.gmra.mxu0 %v77_v25 }
  0xe2   :  { %v359_v29 = vpop.f32.mrf.mxu0 }
  0xe4   :  { %v360_v31 = vpop.f32.mrf.mxu0 }
  0xe5   :  { %v361_v32 = vadd.f32 %v360_v31, %v359_v29 }
  0xe6   :  { %v362_v33 = vpop.f32.mrf.mxu0 }
  0xe7   :  { %v223_v34 = vadd.f32 %v361_v32, %v28_v30 }
  0xe8   :  { %v363_v35 = vpop.f32.mrf.mxu0 }
  0xe9   :  { %225 = vst.msk [vmem:[#allocation2] sm:$0x3] %vm26_vm0, %v223_v34 }
  0xf0   :  { %v229_v37 = vld [vmem:[#allocation2] sm:$0x3] }
  0xf1   :  { %v237_v38 = vadd.f32 %v338_v36, %v229_v37 }
  0xf3   :  { %v238_v39 = vpack.c.bf16 %v237_v38, %v237_v38 }
  0xf5   :  { %373 = vmatmul.mubr.msk.bf16.vlgmr.msra.gmra.mxu1 %vm262_vm2, %v238_v39 }
 0x1b5   :  { %v300_v41 = vpop.f32.mrf.mxu1 }
 0x1b6   :  { %v301_v42 = vadd.f32 %v339_v40, %v300_v41 }
 0x1b7   :  { %v374_v43 = vpop.f32.mrf.mxu1 }
 0x1b8   :  { %306 = vst [vmem:[#allocation3] sm:$0x3] %v301_v42 }
 0x1b9   :  { %v303_v44 = vpop.f32.mrf.mxu1 }
 0x1ba   :  { %409 = shalt.err (!%p406_p4)
}
 0x1bb   :  { %316 = dma.vmem_to_hbm [thread:$0]  %s314_s8, 32, %s527_s5, [#allocation4]   ;;  %v375_v45 = vpop.f32.mrf.mxu1 }
 0x1bc   :  { %418 = dma.done.wait [#allocation4], 32  }
 0x1bd   :  { %419 = vsyncadd [#allocation4], 4294967264 }
 0x1be   :  { %320 = vsyncpa [#allocation4], 1 }

// kernel: tpu_custom_call.1
= control target key start
LH: loop header
LB: loop body
LE: loop exit
PB: predicated region body
PF: predicated region fallthrough
CT: control target
= control target key end

     0   :  { %v74_v8 = vlaneseq  ;;  %v420_v14 = vmov 1966171168   ;;  %s522_s0 = inlined_call_operand.vmem [shape: bf16[2,256], index: 0, kind: input, shape index: {}]   ;;  %s523_s1 = inlined_call_operand.vmem [shape: bf16[256,32], index: 1, kind: input, shape index: {}]   ;;  %s524_s2 = inlined_call_operand.vmem [shape: f32[1,32], index: 2, kind: input, shape index: {}]   ;;  %s525_s3 = inlined_call_operand.vmem [shape: bf16[32,128], index: 3, kind: input, shape index: {}]   ;;  %s526_s4 = inlined_call_operand.vmem [shape: f32[1,128], index: 4, kind: input, shape index: {}]   ;;  %s527_s5 = inlined_call_operand.hbm [shape: f32[2,128], index: 5, kind: output, shape index: {}]  }
   0x1   :  { %v380_v0 = vld [vmem:[%s523_s1 + $0x78] sm:$0xff]   ;;  %v382_v2 = vld [vmem:[%s523_s1 + $0x70] sm:$0xff]   ;;  %v384_v4 = vld [vmem:[%s523_s1 + $0x68] sm:$0xff]   ;;  %v72_v15 = vunpack.c.l.s4 %v420_v14 }
   0x2   :  { %v381_v1 = vld [vmem:[%s523_s1 + $0x38] sm:$0xff]   ;;  %343 = vmatprep.subr.bf16.mxu0 %v380_v0  ;;  %v383_v3 = vld [vmem:[%s523_s1 + $0x30] sm:$0xff]   ;;  %v385_v5 = vld [vmem:[%s523_s1 + $0x28] sm:$0xff]   ;;  %v75_v12 = vshrl.u32 %v74_v8, 7 }
   0x3   :  { %344 = vmatpush3.bf16.msra.mxu0 %v381_v1  ;;  %v386_v6 = vld [vmem:[%s523_s1 + $0x60] sm:$0xff]   ;;  %v388_v9 = vld [vmem:[%s523_s1 + $0x58] sm:$0xff]   ;;  %v390_v11 = vld [vmem:[%s523_s1 + $0x50] sm:$0xff]  }
   0x4   :  { %345 = vmatprep.subr.bf16.mxu0 %v382_v2  ;;  %v387_v7 = vld [vmem:[%s523_s1 + $0x20] sm:$0xff]   ;;  %v389_v10 = vld [vmem:[%s523_s1 + $0x18] sm:$0xff]  }
   0x5   :  { %v321_v13 = vld.sshfl [vmem:[%s522_s0] sm:$0x11 pattern:$0x75316420] }
   0x7   :  { %346 = vmatpush3.bf16.msra.mxu0 %v383_v3 }
   0x8   :  { %347 = vmatprep.subr.bf16.mxu0 %v384_v4 }
   0xb   :  { %348 = vmatpush3.bf16.msra.mxu0 %v385_v5 }
   0xc   :  { %349 = vmatprep.subr.bf16.mxu0 %v386_v6 }
   0xf   :  { %350 = vmatpush3.bf16.msra.mxu0 %v387_v7 }
  0x10   :  { %351 = vmatprep.subr.bf16.mxu0 %v388_v9 }
  0x11   :  { %10 = vsyncpa [#allocation4], 0  ;;  %v391_v16 = vld [vmem:[%s523_s1 + $0x10] sm:$0xff]   ;;  %v70_v17 = vcombine.high %v321_v13, %v321_v13  ;;  %v73_v18 = vunpack.c.0.s8 %v72_v15  ;;  %v392_v19 = vld [vmem:[%s523_s1 + $0x48] sm:$0xff]   ;;  %vm26_vm0 = vcmask 254976   ;;  %v421_v26 = vmov 0.0  }
  0x12   :  { %v393_v21 = vld [vmem:[%s523_s1 + $0x8] sm:$0xff]   ;;  %v394_v23 = vld [vmem:[%s523_s1 + $0x40] sm:$0xff]   ;;  %27 = vst.msk [vmem:[#allocation2] sm:$0x3] %vm26_vm0, %v421_v26  ;;  %368 = vmatprep.subr.bf16.mxu1 %v421_v26  ;;  %vm422_vm1 = vmmov 0   ;;  %vm262_vm2 = vcmask 261120  }
  0x13   :  { %352 = vmatpush3.bf16.msra.mxu0 %v389_v10  ;;  %v76_v20 = vsub.s32 %v73_v18, %v75_v12  ;;  %v395_v24 = vld [vmem:[%s523_s1] sm:$0xff]   ;;  %v396_v27 = vld [vmem:[%s525_s3 + $0x8] sm:$0xff]   ;;  %372 = vmatprep.mubr.msk.bf16.mxu1 %vm422_vm1, %v421_v26  ;;  %s423_s7 = smov [#allocation3]  }
  0x14   :  { %353 = vmatprep.subr.bf16.mxu0 %v390_v11  ;;  %369 = vmatpush3.bf16.msra.mxu1 %v396_v27  ;;  %v397_v28 = vld [vmem:[%s525_s3] sm:$0xff]   ;;  %s313_s8 = sshll.u32 %s423_s7, 4  ;;  %s314_s8 = int_to_ptr.vmem [resolvable:$true] %s313_s8 }
  0x15   :  { %v84_v22 = vrot.slane %v70_v17, %v76_v20  ;;  %v77_v25 = vrot.slane %v321_v13, %v76_v20  ;;  %370 = vmatprep.subr.bf16.mxu1 %v421_v26  ;;  %v338_v36 = vld [vmem:[%s524_s2] ss:$0 sm:$0xff]  ;;  %s398_s9 = scalar_lea.vmem %s314_s8, 32  ;;  %p403_p1 = scmp.lt.s32.totalorder %s314_s8, %s314_s8 }
  0x16   :  { %v339_v40 = vld [vmem:[%s526_s4] ss:$0 sm:$0xff]  ;;  %p399_p0 = scmp.ne.s32.totalorder %s314_s8, %s398_s9  ;;  %p404_p2 = scmp.lt.s32.totalorder %s398_s9, %s398_s9 }
  0x17   :  { %354 = vmatpush3.bf16.msra.mxu0 %v391_v16  ;;  %215 = vmatprep.mubr.bf16.mxu0 %v84_v22 }
  0x18   :  { %355 = vmatprep.subr.bf16.mxu0 %v392_v19  ;;  %371 = vmatpush3.bf16.msra.mxu1 %v397_v28  ;;  %p405_p3 = por %p404_p2, %p403_p1 }
  0x19   :  { %v28_v30 = vld [vmem:[#allocation2] sm:$0x3] }
  0x1a   :  { %p406_p4 = pnand %p405_p3, %p399_p0 }
  0x1b   :  { %356 = vmatpush3.bf16.msra.mxu0 %v393_v21 }
  0x1c   :  { %357 = vmatprep.subr.bf16.mxu0 %v394_v23 }
  0x1f   :  { %358 = vmatpush3.bf16.msra.mxu0 %v395_v24 }
  0x22   :  { %216 = vmatmul.mubr.bf16.vlgmr.msra.gmra.mxu0 %v77_v25 }
  0xe2   :  { %v359_v29 = vpop.f32.mrf.mxu0 }
  0xe4   :  { %v360_v31 = vpop.f32.mrf.mxu0 }
  0xe5   :  { %v361_v32 = vadd.f32 %v360_v31, %v359_v29 }
  0xe6   :  { %v362_v33 = vpop.f32.mrf.mxu0 }
  0xe7   :  { %v223_v34 = vadd.f32 %v361_v32, %v28_v30 }
  0xe8   :  { %v363_v35 = vpop.f32.mrf.mxu0 }
  0xe9   :  { %225 = vst.msk [vmem:[#allocation2] sm:$0x3] %vm26_vm0, %v223_v34 }
  0xf0   :  { %v229_v37 = vld [vmem:[#allocation2] sm:$0x3] }
  0xf1   :  { %v237_v38 = vadd.f32 %v338_v36, %v229_v37 }
  0xf3   :  { %v238_v39 = vpack.c.bf16 %v237_v38, %v237_v38 }
  0xf5   :  { %373 = vmatmul.mubr.msk.bf16.vlgmr.msra.gmra.mxu1 %vm262_vm2, %v238_v39 }
 0x1b5   :  { %v300_v41 = vpop.f32.mrf.mxu1 }
 0x1b6   :  { %v301_v42 = vadd.f32 %v339_v40, %v300_v41 }
 0x1b7   :  { %v374_v43 = vpop.f32.mrf.mxu1 }
 0x1b8   :  { %306 = vst [vmem:[#allocation3] sm:$0x3] %v301_v42 }
 0x1b9   :  { %v303_v44 = vpop.f32.mrf.mxu1 }
 0x1ba   :  { %409 = shalt.err (!%p406_p4)
}
 0x1bb   :  { %316 = dma.vmem_to_hbm [thread:$0]  %s314_s8, 32, %s527_s5, [#allocation4]   ;;  %v375_v45 = vpop.f32.mrf.mxu1 }
 0x1bc   :  { %418 = dma.done.wait [#allocation4], 32  }
 0x1bd   :  { %419 = vsyncadd [#allocation4], 4294967264 }
 0x1be   :  { %320 = vsyncpa [#allocation4], 1 }

</bundles_post_ra>
